<compile_context>
chip_gen: v6e
topology: v6e:2x2x1
jax: 0.10.0
libtpu: 0.0.40
codegen_flags: <defaults>
</compile_context>

<pallas_src>
import jax
import jax.numpy as jnp
from jax.experimental import pallas as pl
from jax.experimental.pallas import tpu as pltpu


# --------------------------------------------------------------------------
# Config (small, consistent with the module's __init__)
# --------------------------------------------------------------------------
POOLER_RESOLUTION = 8          # cfg.MODEL.ROI_BOX_HEAD.POOLER_RESOLUTION
POOLER_SCALES = (0.25,)        # single FPN level
SAMPLING_RATIO = 2             # cfg.MODEL.ROI_BOX_HEAD.POOLER_SAMPLING_RATIO
MLP_HEAD_DIM = 32              # cfg.MODEL.ROI_BOX_HEAD.MLP_HEAD_DIM
IN_CHANNELS = 4


def _round_up(x, m):
    return (x + m - 1) // m * m


# --------------------------------------------------------------------------
# ROIAlign (maskrcnn_benchmark semantics, aligned=False) as einsum — JAX glue.
# No gathers: per-axis bilinear weights are built with one-hot vector math and
# pooling is a dense contraction against the feature map.
# --------------------------------------------------------------------------
def roi_align_einsum(feat, rois, output_size, spatial_scale, sampling_ratio):
    """feat: [B, C, H, W] f32; rois: [K, 5] = (batch_idx, x1, y1, x2, y2).
    Returns pooled ROIs [K, C, R, R]."""
    B, C, H, W = feat.shape
    R = output_size
    sr = sampling_ratio

    bidx = rois[:, 0].astype(jnp.int32)                       # [K]
    x1 = rois[:, 1] * spatial_scale
    y1 = rois[:, 2] * spatial_scale
    x2 = rois[:, 3] * spatial_scale
    y2 = rois[:, 4] * spatial_scale
    roi_w = jnp.maximum(x2 - x1, 1.0)
    roi_h = jnp.maximum(y2 - y1, 1.0)
    bin_w = roi_w / R                                          # [K]
    bin_h = roi_h / R

    samp = (jnp.arange(sr, dtype=jnp.float32) + 0.5) / sr      # [sr]
    bins = jnp.arange(R, dtype=jnp.float32)                    # [R]
    # Sample coordinates per ROI / bin / sample: [K, R, sr]
    ys = y1[:, None, None] + (bins[None, :, None] + samp[None, None, :]) * bin_h[:, None, None]
    xs = x1[:, None, None] + (bins[None, :, None] + samp[None, None, :]) * bin_w[:, None, None]

    def axis_weights(coords, n):
        """Bilinear weights along one axis, summed over the sr samples of each
        bin. coords: [K, R, sr] -> [K, R, n]."""
        valid = (coords >= -1.0) & (coords <= float(n))
        c = jnp.clip(coords, 0.0, float(n - 1))
        c0 = jnp.floor(c)
        l = c - c0                                             # low weight on c1
        h = 1.0 - l                                            # high weight on c0
        c0i = c0.astype(jnp.int32)
        c1i = jnp.minimum(c0i + 1, n - 1)
        grid = jnp.arange(n, dtype=jnp.int32)
        w = (h[..., None] * (c0i[..., None] == grid).astype(jnp.float32)
             + l[..., None] * (c1i[..., None] == grid).astype(jnp.float32))
        w = jnp.where(valid[..., None], w, 0.0)
        return w.sum(axis=2)                                   # [K, R, n]

    wy = axis_weights(ys, H)                                   # [K, R, H]
    wx = axis_weights(xs, W)                                   # [K, R, W]

    # Batch selection via one-hot folded into the row weights (no gather).
    onehot_b = (bidx[:, None] == jnp.arange(B)[None, :]).astype(jnp.float32)   # [K, B]
    wyb = wy[:, :, None, :] * onehot_b[:, None, :, None]       # [K, R, B, H]

    tmp = jnp.einsum('kybh,bchw->kcyw', wyb, feat)             # [K, C, R, W]
    pooled = jnp.einsum('kxw,kcyw->kcyx', wx, tmp) / float(sr * sr)  # [K, C, R, R]
    return pooled


# --------------------------------------------------------------------------
# Pallas kernel: fused fc6 -> ReLU -> fc7 -> ReLU with a D_in reduction axis.
# --------------------------------------------------------------------------
def mlp_head_kernel(x_ref, w6_ref, b6_ref, w7_ref, b7_ref, o_ref, acc_ref):
    # x_ref: (tm, tk) bf16, w6_ref: (tk, HP) bf16, b6/b7: (1, HP) f32,
    # w7_ref: (HP, HP) bf16, o_ref: (tm, HP) f32, acc_ref: (tm, HP) f32.
    k = pl.program_id(1)

    @pl.when(k == 0)
    def _init():
        # Fold fc6 bias into the accumulator init (broadcast add over sublanes).
        acc_ref[...] = jnp.zeros_like(acc_ref) + b6_ref[...]

    # Partial fc6: bf16 inputs, f32 accumulation on the MXU.
    acc_ref[...] += jnp.dot(x_ref[...], w6_ref[...],
                            preferred_element_type=jnp.float32)

    @pl.when(k == pl.num_programs(1) - 1)
    def _finalize():
        h = jnp.maximum(acc_ref[...], 0.0)                     # ReLU(fc6)
        h = jnp.dot(h.astype(w7_ref.dtype), w7_ref[...],
                    preferred_element_type=jnp.float32)        # fc7 (bf16 in, f32 acc)
        h = jnp.maximum(h + b7_ref[...], 0.0)                  # ReLU(fc7)
        o_ref[...] = h.astype(o_ref.dtype)


def mlp_head(x, w6, b6, w7, b7, *, tm=128, tk=2048, lane=128):
    """x: (K, D) f32 -> (K, H) f32.  Pads K, D and H internally; no divisibility
    requirements on the caller."""
    K, D = x.shape
    H = w6.shape[1]

    # Lane-dense hidden dim (unmasked stores, full-width MXU N).
    HP = _round_up(H, lane)
    # D_in padded and tiled for the reduction axis.
    Dp = _round_up(D, lane)
    tk = min(tk, Dp)
    Dp = _round_up(Dp, tk)
    # ROI rows padded to the row tile (bf16 sublane packing -> multiple of 16).
    Kp = _round_up(K, 16)
    tm = min(tm, Kp)
    Kp = _round_up(Kp, tm)

    # Zero-pad and cast matmul operands to bf16 (f32 accumulate in-kernel).
    xp = jnp.zeros((Kp, Dp), jnp.bfloat16).at[:K, :D].set(x.astype(jnp.bfloat16))
    w6p = jnp.zeros((Dp, HP), jnp.bfloat16).at[:D, :H].set(w6.astype(jnp.bfloat16))
    w7p = jnp.zeros((HP, HP), jnp.bfloat16).at[:H, :H].set(w7.astype(jnp.bfloat16))
    b6p = jnp.zeros((1, HP), jnp.float32).at[:, :H].set(b6.reshape(1, H).astype(jnp.float32))
    b7p = jnp.zeros((1, HP), jnp.float32).at[:, :H].set(b7.reshape(1, H).astype(jnp.float32))

    grid = (Kp // tm, Dp // tk)
    out = pl.pallas_call(
        mlp_head_kernel,
        out_shape=jax.ShapeDtypeStruct((Kp, HP), jnp.float32),
        grid_spec=pltpu.PrefetchScalarGridSpec(
            num_scalar_prefetch=0,
            grid=grid,
            in_specs=[
                pl.BlockSpec((tm, tk), lambda i, k: (i, k)),    # x tile
                pl.BlockSpec((tk, HP), lambda i, k: (k, 0)),    # fc6 weight tile (streams over k)
                pl.BlockSpec((1, HP), lambda i, k: (0, 0)),     # fc6 bias (constant block)
                pl.BlockSpec((HP, HP), lambda i, k: (0, 0)),    # fc7 weight (constant block)
                pl.BlockSpec((1, HP), lambda i, k: (0, 0)),     # fc7 bias (constant block)
            ],
            out_specs=pl.BlockSpec((tm, HP), lambda i, k: (i, 0)),
            scratch_shapes=[pltpu.VMEM((tm, HP), jnp.float32)],
        ),
        compiler_params=pltpu.CompilerParams(
            dimension_semantics=("parallel", "arbitrary"),
        ),
    )(xp, w6p, b6p, w7p, b7p)
    return out[:K, :H]


# --------------------------------------------------------------------------
# Full forward: Pooler (einsum, no gathers) -> flatten -> Pallas MLP head
# --------------------------------------------------------------------------
@jax.jit
def fpn2mlp_forward(features, rois, w6, b6, w7, b7):
    pooled = roi_align_einsum(features, rois, POOLER_RESOLUTION,
                              POOLER_SCALES[0], SAMPLING_RATIO)    # (K, C, R, R)
    flat = pooled.reshape(pooled.shape[0], -1)                     # (K, C*R*R)
    return mlp_head(flat, w6, b6, w7, b7)                          # (K, MLP_HEAD_DIM)


# --------------------------------------------------------------------------
# Pure-JAX reference (gather-based ROIAlign + f32 MLP) for the self-check.
# --------------------------------------------------------------------------
def roi_align_ref(feat, rois, output_size, spatial_scale, sampling_ratio):
    B, C, H, W = feat.shape
    R = output_size
    sr = sampling_ratio

    def one_roi(roi):
        bidx = roi[0].astype(jnp.int32)
        x1 = roi[1] * spatial_scale
        y1 = roi[2] * spatial_scale
        x2 = roi[3] * spatial_scale
        y2 = roi[4] * spatial_scale
        roi_w = jnp.maximum(x2 - x1, 1.0)
        roi_h = jnp.maximum(y2 - y1, 1.0)
        bin_w = roi_w / R
        bin_h = roi_h / R
        samp = (jnp.arange(sr, dtype=jnp.float32) + 0.5) / sr
        bins = jnp.arange(R, dtype=jnp.float32)
        ys = (y1 + bins[:, None] * bin_h + samp[None, :] * bin_h).reshape(-1)
        xs = (x1 + bins[:, None] * bin_w + samp[None, :] * bin_w).reshape(-1)
        fmap = feat[bidx]

        def bilinear(y, x):
            valid = (y >= -1.0) & (y <= H) & (x >= -1.0) & (x <= W)
            y = jnp.clip(y, 0.0, H - 1.0)
            x = jnp.clip(x, 0.0, W - 1.0)
            y0 = jnp.floor(y).astype(jnp.int32)
            x0 = jnp.floor(x).astype(jnp.int32)
            y1i = jnp.minimum(y0 + 1, H - 1)
            x1i = jnp.minimum(x0 + 1, W - 1)
            ly = y - y0.astype(jnp.float32)
            lx = x - x0.astype(jnp.float32)
            hy = 1.0 - ly
            hx = 1.0 - lx
            val = (hy * hx * fmap[:, y0, x0] + hy * lx * fmap[:, y0, x1i]
                   + ly * hx * fmap[:, y1i, x0] + ly * lx * fmap[:, y1i, x1i])
            return jnp.where(valid, val, 0.0)

        vals = jax.vmap(lambda y: jax.vmap(lambda x: bilinear(y, x))(xs))(ys)
        vals = vals.reshape(R, sr, R, sr, C).mean(axis=(1, 3))
        return jnp.transpose(vals, (2, 0, 1))

    return jax.vmap(one_roi)(rois)


def _make_fc_params(key, fan_in, fan_out):
    # make_fc -> nn.Linear with kaiming_uniform_(weight, a=1), bias = 0
    bound = (3.0 / fan_in) ** 0.5
    w = jax.random.uniform(key, (fan_in, fan_out), jnp.float32, -bound, bound)
    b = jnp.zeros((1, fan_out), jnp.float32)
    return w, b


if __name__ == "__main__":
    key = jax.random.PRNGKey(0)
    k_feat, k_box, k_w6, k_w7 = jax.random.split(key, 4)

    B, C = 2, IN_CHANNELS
    IMG = 64                                   # image size; scale 0.25 -> 16x16 feature map
    Hf = Wf = int(IMG * POOLER_SCALES[0])
    features = jax.random.normal(k_feat, (B, C, Hf, Wf), jnp.float32)

    # 8 proposals per image -> K = 16 ROIs; rois = (batch_idx, x1, y1, x2, y2)
    n_per_img = 8
    K = B * n_per_img
    kxy1, kwh = jax.random.split(k_box)
    xy1 = jax.random.uniform(kxy1, (K, 2), jnp.float32, 0.0, IMG * 0.5)
    wh = jax.random.uniform(kwh, (K, 2), jnp.float32, 4.0, IMG * 0.5)
    xy2 = jnp.minimum(xy1 + wh, float(IMG - 1))
    batch_idx = jnp.repeat(jnp.arange(B, dtype=jnp.float32), n_per_img)[:, None]
    rois = jnp.concatenate([batch_idx, xy1[:, :1], xy1[:, 1:], xy2[:, :1], xy2[:, 1:]], axis=1)

    D_in = C * POOLER_RESOLUTION ** 2          # in_channels * resolution**2 = 256
    H = MLP_HEAD_DIM                           # representation_size = 32
    w6, b6 = _make_fc_params(k_w6, D_in, H)
    w7, b7 = _make_fc_params(k_w7, H, H)

    out = fpn2mlp_forward(features, rois, w6, b6, w7, b7)
    out = jax.block_until_ready(out)

    # Reference check (pure JAX, gather ROIAlign + f32 MLP). The kernel runs
    # the matmuls with bf16 inputs / f32 accumulation, so allow bf16-level
    # tolerance.
    pooled_ref = roi_align_ref(features, rois, POOLER_RESOLUTION,
                               POOLER_SCALES[0], SAMPLING_RATIO)
    flat_ref = pooled_ref.reshape(K, -1)
    h_ref = jnp.maximum(flat_ref @ w6 + b6, 0.0)
    ref = jnp.maximum(h_ref @ w7 + b7, 0.0)
    assert out.shape == (K, H)
    assert jnp.allclose(out, ref, atol=2e-2, rtol=2e-2), float(jnp.abs(out - ref).max())

    print("KERNEL_OK")
</pallas_src>

<mosaic_0001>
module attributes {stable_mosaic.version = 11 : i64} {
  func.func @mlp_head_kernel(%arg0: i32, %arg1: i32, %arg2: memref<16x256xbf16, #tpu.memory_space<vmem>>, %arg3: memref<256x128xbf16, #tpu.memory_space<vmem>>, %arg4: memref<1x128xf32, #tpu.memory_space<vmem>>, %arg5: memref<128x128xbf16, #tpu.memory_space<vmem>>, %arg6: memref<1x128xf32, #tpu.memory_space<vmem>>, %arg7: memref<16x128xf32, #tpu.memory_space<vmem>>, %arg8: memref<16x128xf32, #tpu.memory_space<vmem>>) attributes {dimension_semantics = [#tpu.dimension_semantics<parallel>, #tpu.dimension_semantics<arbitrary>], iteration_bounds = array<i64: 1, 1>, scalar_prefetch = 0 : i64, scratch_operands = 1 : i64, tpu.core_type = #tpu.core_type<tc>, window_params = [{transform_indices = @transform_0, window_bounds = array<i64: 16, 256>}, {transform_indices = @transform_1, window_bounds = array<i64: 256, 128>}, {pipeline_mode = #tpu.pipeline_mode<synchronous>, transform_indices = @transform_2, window_bounds = array<i64: 1, 128>}, {pipeline_mode = #tpu.pipeline_mode<synchronous>, transform_indices = @transform_3, window_bounds = array<i64: 128, 128>}, {pipeline_mode = #tpu.pipeline_mode<synchronous>, transform_indices = @transform_4, window_bounds = array<i64: 1, 128>}, {transform_indices = @transform_5, window_bounds = array<i64: 16, 128>}]} {
    %c0_i32 = arith.constant 0 : i32
    %0 = arith.cmpi eq, %arg1, %c0_i32 : i32
    %1 = arith.extui %0 : i1 to i32
    %c0_i32_0 = arith.constant 0 : i32
    %2 = arith.cmpi ne, %1, %c0_i32_0 : i32
    scf.if %2 {
      %cst_10 = arith.constant 0.000000e+00 : f32
      %12 = vector.broadcast %cst_10 : f32 to vector<16x128xf32>
      %c0_11 = arith.constant 0 : index
      %c0_12 = arith.constant 0 : index
      %13 = vector.load %arg4[%c0_11, %c0_12] : memref<1x128xf32, #tpu.memory_space<vmem>>, vector<1x128xf32>
      %14 = vector.broadcast %13 : vector<1x128xf32> to vector<16x128xf32>
      %15 = arith.addf %12, %14 : vector<16x128xf32>
      %c0_13 = arith.constant 0 : index
      %c0_14 = arith.constant 0 : index
      %16 = vector.load %arg8[%c0_13, %c0_14] : memref<16x128xf32, #tpu.memory_space<vmem>>, vector<16x128xf32>
      tpu.vector_store %arg8[%c0_13, %c0_14], %15 {strides = array<i32>} : memref<16x128xf32, #tpu.memory_space<vmem>>, vector<16x128xf32>,
    } else {
    }
    %c0 = arith.constant 0 : index
    %c0_1 = arith.constant 0 : index
    %3 = vector.load %arg8[%c0, %c0_1] : memref<16x128xf32, #tpu.memory_space<vmem>>, vector<16x128xf32>
    %c0_2 = arith.constant 0 : index
    %c0_3 = arith.constant 0 : index
    %4 = vector.load %arg2[%c0_2, %c0_3] : memref<16x256xbf16, #tpu.memory_space<vmem>>, vector<16x256xbf16>
    %c0_4 = arith.constant 0 : index
    %c0_5 = arith.constant 0 : index
    %5 = vector.load %arg3[%c0_4, %c0_5] : memref<256x128xbf16, #tpu.memory_space<vmem>>, vector<256x128xbf16>
    %cst = arith.constant dense<0.000000e+00> : vector<16x128xf32>
    %6 = tpu.matmul %4, %5, %cst {dimension_numbers = #tpu.dot_dimension_numbers<[1], [0], [0], [1], [0, 0, 1, 1], [], []>} : vector<16x256xbf16>, vector<256x128xbf16>, vector<16x128xf32> -> vector<16x128xf32>
    %7 = arith.addf %3, %6 : vector<16x128xf32>
    %c0_6 = arith.constant 0 : index
    %c0_7 = arith.constant 0 : index
    %8 = vector.load %arg8[%c0_6, %c0_7] : memref<16x128xf32, #tpu.memory_space<vmem>>, vector<16x128xf32>
    tpu.vector_store %arg8[%c0_6, %c0_7], %7 {strides = array<i32>} : memref<16x128xf32, #tpu.memory_space<vmem>>, vector<16x128xf32>,
    %c0_i32_8 = arith.constant 0 : i32
    %9 = arith.cmpi eq, %arg1, %c0_i32_8 : i32
    %10 = arith.extui %9 : i1 to i32
    %c0_i32_9 = arith.constant 0 : i32
    %11 = arith.cmpi ne, %10, %c0_i32_9 : i32
    scf.if %11 {
      %c0_10 = arith.constant 0 : index
      %c0_11 = arith.constant 0 : index
      %12 = vector.load %arg8[%c0_10, %c0_11] : memref<16x128xf32, #tpu.memory_space<vmem>>, vector<16x128xf32>
      %cst_12 = arith.constant 0.000000e+00 : f32
      %13 = vector.broadcast %cst_12 : f32 to vector<16x128xf32>
      %14 = arith.maximumf %12, %13 : vector<16x128xf32>
      %15 = arith.truncf %14 : vector<16x128xf32> to vector<16x128xbf16>
      %c0_13 = arith.constant 0 : index
      %c0_14 = arith.constant 0 : index
      %16 = vector.load %arg5[%c0_13, %c0_14] : memref<128x128xbf16, #tpu.memory_space<vmem>>, vector<128x128xbf16>
      %cst_15 = arith.constant dense<0.000000e+00> : vector<16x128xf32>
      %17 = tpu.matmul %15, %16, %cst_15 {dimension_numbers = #tpu.dot_dimension_numbers<[1], [0], [0], [1], [0, 0, 1, 1], [], []>} : vector<16x128xbf16>, vector<128x128xbf16>, vector<16x128xf32> -> vector<16x128xf32>
      %c0_16 = arith.constant 0 : index
      %c0_17 = arith.constant 0 : index
      %18 = vector.load %arg6[%c0_16, %c0_17] : memref<1x128xf32, #tpu.memory_space<vmem>>, vector<1x128xf32>
      %19 = vector.broadcast %18 : vector<1x128xf32> to vector<16x128xf32>
      %20 = arith.addf %17, %19 : vector<16x128xf32>
      %cst_18 = arith.constant 0.000000e+00 : f32
      %21 = vector.broadcast %cst_18 : f32 to vector<16x128xf32>
      %22 = arith.maximumf %20, %21 : vector<16x128xf32>
      %c0_19 = arith.constant 0 : index
      %c0_20 = arith.constant 0 : index
      %23 = vector.load %arg7[%c0_19, %c0_20] : memref<16x128xf32, #tpu.memory_space<vmem>>, vector<16x128xf32>
      tpu.vector_store %arg7[%c0_19, %c0_20], %22 {strides = array<i32>} : memref<16x128xf32, #tpu.memory_space<vmem>>, vector<16x128xf32>,
    } else {
    }
    return
  }
  func.func @transform_0(%arg0: i32, %arg1: i32) -> (i32, i32) {
    %c0_i32 = arith.constant 0 : i32
    return %arg0, %arg1 : i32, i32
  }
  func.func @transform_1(%arg0: i32, %arg1: i32) -> (i32, i32) {
    %c0_i32 = arith.constant 0 : i32
    %c0_i32_0 = arith.constant 0 : i32
    return %arg1, %c0_i32 : i32, i32
  }
  func.func @transform_2(%arg0: i32, %arg1: i32) -> (i32, i32) {
    %c0_i32 = arith.constant 0 : i32
    %c0_i32_0 = arith.constant 0 : i32
    %c0_i32_1 = arith.constant 0 : i32
    return %c0_i32, %c0_i32_0 : i32, i32
  }
  func.func @transform_3(%arg0: i32, %arg1: i32) -> (i32, i32) {
    %c0_i32 = arith.constant 0 : i32
    %c0_i32_0 = arith.constant 0 : i32
    %c0_i32_1 = arith.constant 0 : i32
    return %c0_i32, %c0_i32_0 : i32, i32
  }
  func.func @transform_4(%arg0: i32, %arg1: i32) -> (i32, i32) {
    %c0_i32 = arith.constant 0 : i32
    %c0_i32_0 = arith.constant 0 : i32
    %c0_i32_1 = arith.constant 0 : i32
    return %c0_i32, %c0_i32_0 : i32, i32
  }
  func.func @transform_5(%arg0: i32, %arg1: i32) -> (i32, i32) {
    %c0_i32 = arith.constant 0 : i32
    %c0_i32_0 = arith.constant 0 : i32
    return %arg0, %c0_i32 : i32, i32
  }
}

</mosaic_0001>

<bundles_post_ra>
// kernel: fpn2mlp_forward.1
= control target key start
LH: loop header
LB: loop body
LE: loop exit
PB: predicated region body
PF: predicated region fallthrough
CT: control target
= control target key end

     0   :  { %v496_v2 = vmov 0.0   ;;  %s618_s0 = inlined_call_operand.vmem [shape: bf16[16,256], index: 0, kind: input, shape index: {}]   ;;  %s619_s1 = inlined_call_operand.vmem [shape: bf16[256,128], index: 1, kind: input, shape index: {}]   ;;  %s620_s2 = inlined_call_operand.vmem [shape: f32[1,128], index: 2, kind: input, shape index: {}]   ;;  %s621_s3 = inlined_call_operand.vmem [shape: bf16[128,128], index: 3, kind: input, shape index: {}]   ;;  %s622_s4 = inlined_call_operand.vmem [shape: f32[1,128], index: 4, kind: input, shape index: {}]   ;;  %s623_s5 = inlined_call_operand.hbm [shape: f32[16,128], index: 5, kind: output, shape index: {}]  }
   0x1   :  { %v447_v0 = vld [vmem:[%s619_s1 + $0x78] sm:$0xff]   ;;  %422 = vmatprep.subr.bf16.mxu1 %v496_v2  ;;  %v449_v3 = vld [vmem:[%s619_s1 + $0x70] sm:$0xff]   ;;  %v451_v5 = vld [vmem:[%s619_s1 + $0x68] sm:$0xff]  }
   0x2   :  { %v448_v1 = vld [vmem:[%s619_s1 + $0x38] sm:$0xff]   ;;  %391 = vmatprep.subr.bf16.mxu0 %v447_v0  ;;  %v450_v4 = vld [vmem:[%s619_s1 + $0x30] sm:$0xff]   ;;  %v452_v6 = vld [vmem:[%s619_s1 + $0x28] sm:$0xff]  }
   0x3   :  { %392 = vmatpush3.bf16.msra.mxu0 %v448_v1  ;;  %v453_v7 = vld [vmem:[%s619_s1 + $0x60] sm:$0xff]   ;;  %v455_v9 = vld [vmem:[%s619_s1 + $0x58] sm:$0xff]   ;;  %v457_v11 = vld [vmem:[%s619_s1 + $0x50] sm:$0xff]  }
   0x4   :  { %393 = vmatprep.subr.bf16.mxu0 %v449_v3  ;;  %v454_v8 = vld [vmem:[%s619_s1 + $0x20] sm:$0xff]   ;;  %v456_v10 = vld [vmem:[%s619_s1 + $0x18] sm:$0xff]   ;;  %v458_v12 = vld [vmem:[%s619_s1 + $0x10] sm:$0xff]  }
   0x5   :  { %v465_v13 = vld [vmem:[%s618_s0 + $0x4] ss:$8 sps:$4 sm:$0xff]   ;;  %v466_v14 = vld [vmem:[%s621_s3 + $0x38] sm:$0xff]   ;;  %v467_v16 = vld [vmem:[%s621_s3 + $0x30] sm:$0xff]  }
   0x6   :  { %v459_v15 = vld [vmem:[%s619_s1 + $0x48] sm:$0xff]   ;;  %210 = vmatprep.mubr.bf16.mxu0 %v465_v13  ;;  %423 = vmatpush3.bf16.msra.mxu1 %v466_v14  ;;  %v461_v18 = vld [vmem:[%s619_s1 + $0x40] sm:$0xff]  }
   0x7   :  { %394 = vmatpush3.bf16.msra.mxu0 %v450_v4  ;;  %v460_v17 = vld [vmem:[%s619_s1 + $0x8] sm:$0xff]   ;;  %424 = vmatprep.subr.bf16.mxu1 %v496_v2 }
   0x8   :  { %395 = vmatprep.subr.bf16.mxu0 %v451_v5  ;;  %v468_v19 = vld [vmem:[%s621_s3 + $0x28] sm:$0xff]  }
   0xa   :  { %425 = vmatpush3.bf16.msra.mxu1 %v467_v16 }
   0xb   :  { %396 = vmatpush3.bf16.msra.mxu0 %v452_v6 }
   0xc   :  { %397 = vmatprep.subr.bf16.mxu0 %v453_v7 }
   0xf   :  { %398 = vmatpush3.bf16.msra.mxu0 %v454_v8 }
  0x10   :  { %399 = vmatprep.subr.bf16.mxu0 %v455_v9 }
  0x13   :  { %400 = vmatpush3.bf16.msra.mxu0 %v456_v10 }
  0x14   :  { %401 = vmatprep.subr.bf16.mxu0 %v457_v11 }
  0x17   :  { %402 = vmatpush3.bf16.msra.mxu0 %v458_v12 }
  0x18   :  { %403 = vmatprep.subr.bf16.mxu0 %v459_v15 }
  0x19   :  { %10 = vsyncpa [#allocation4], 0  ;;  %426 = vmatprep.subr.bf16.mxu1 %v496_v2  ;;  %v462_v20 = vld [vmem:[%s619_s1] sm:$0xff]   ;;  %v470_v23 = vld [vmem:[%s621_s3 + $0x18] sm:$0xff]   ;;  %vm497_vm0 = vmmov 0   ;;  %s498_s21 = smov [#allocation3]  }
  0x1a   :  { %427 = vmatpush3.bf16.msra.mxu1 %v468_v19  ;;  %v469_v21 = vld [vmem:[%s621_s3 + $0x20] sm:$0xff]   ;;  %v471_v24 = vld [vmem:[%s621_s3 + $0x10] sm:$0xff]   ;;  %v472_v25 = vld [vmem:[%s621_s3 + $0x8] sm:$0xff]   ;;  %438 = vmatprep.mubr.msk.bf16.mxu1 %vm497_vm0, %v496_v2  ;;  %s352_s22 = sshll.u32 %s498_s21, 4  ;;  %s353_s22 = int_to_ptr.vmem [resolvable:$true] %s352_s22 }
  0x1b   :  { %404 = vmatpush3.bf16.msra.mxu0 %v460_v17  ;;  %428 = vmatprep.subr.bf16.mxu1 %v496_v2  ;;  %v463_v22 = vld [vmem:[%s618_s0] ss:$8 sps:$4 sm:$0xff]   ;;  %p479_p1 = scmp.lt.s32.totalorder %s353_s22, %s353_s22 }
  0x1c   :  { %405 = vmatprep.subr.bf16.mxu0 %v461_v18  ;;  %v473_v26 = vld [vmem:[%s621_s3] sm:$0xff]  }
  0x1d   :  { %v363_v30 = vld [vmem:[%s620_s2] ss:$0 sm:$0xff]  ;;  %s474_s2 = scalar_lea.vmem %s353_s22, 256 }
  0x1e   :  { %429 = vmatpush3.bf16.msra.mxu1 %v469_v21  ;;  %v382_v39 = vld [vmem:[%s622_s4] ss:$0 sm:$0xff]  ;;  %p475_p0 = scmp.ne.s32.totalorder %s353_s22, %s474_s2  ;;  %p480_p2 = scmp.lt.s32.totalorder %s474_s2, %s474_s2 }
  0x1f   :  { %406 = vmatpush3.bf16.msra.mxu0 %v462_v20  ;;  %430 = vmatprep.subr.bf16.mxu1 %v496_v2 }
  0x20   :  { %p481_p3 = por %p480_p2, %p479_p1 }
  0x22   :  { %211 = vmatmul.mubr.bf16.vlgmr.msra.gmra.mxu0 %v463_v22  ;;  %431 = vmatpush3.bf16.msra.mxu1 %v470_v23  ;;  %p482_p4 = pnand %p481_p3, %p475_p0 }
  0x23   :  { %432 = vmatprep.subr.bf16.mxu1 %v496_v2 }
  0x26   :  { %433 = vmatpush3.bf16.msra.mxu1 %v471_v24 }
  0x27   :  { %434 = vmatprep.subr.bf16.mxu1 %v496_v2 }
  0x2a   :  { %435 = vmatpush3.bf16.msra.mxu1 %v472_v25 }
  0x2b   :  { %436 = vmatprep.subr.bf16.mxu1 %v496_v2 }
  0x2e   :  { %437 = vmatpush3.bf16.msra.mxu1 %v473_v26 }
  0xe2   :  { %v407_v27 = vpop.f32.mrf.mxu0 }
  0xe4   :  { %v408_v28 = vpop.f32.mrf.mxu0 }
  0xe5   :  { %v409_v29 = vadd.f32 %v408_v28, %v407_v27 }
  0xe6   :  { %v410_v31 = vpop.f32.mrf.mxu0 }
  0xe7   :  { %v219_v33 = vadd.f32 %v409_v29, %v363_v30 }
  0xe8   :  { %v411_v32 = vpop.f32.mrf.mxu0 }
  0xe9   :  { %v412_v34 = vadd.f32 %v411_v32, %v410_v31  ;;  %v228_v36 = vmax.f32 %v219_v33, 0.0 }
  0xeb   :  { %v220_v35 = vadd.f32 %v412_v34, %v363_v30 }
  0xed   :  { %v229_v37 = vmax.f32 %v220_v35, 0.0 }
  0xef   :  { %v230_v38 = vpack.c.bf16 %v229_v37, %v228_v36 }
  0xf1   :  { %439 = vmatmul.mubr.bf16.vlgmr.msra.gmra.mxu1 %v230_v38 }
 0x1b1   :  { %v336_v40 = vpop.f32.mrf.mxu1 }
 0x1b2   :  { %v337_v41 = vadd.f32 %v382_v39, %v336_v40 }
 0x1b3   :  { %v440_v42 = vpop.f32.mrf.mxu1 }
 0x1b4   :  { %v343_v43 = vmax.f32 %v337_v41, 0.0 }
 0x1b5   :  { %v339_v44 = vpop.f32.mrf.mxu1 }
 0x1b6   :  { %345 = vst [vmem:[#allocation3] sm:$0xff] %v343_v43  ;;  %v340_v45 = vadd.f32 %v382_v39, %v339_v44 }
 0x1b7   :  { %v441_v46 = vpop.f32.mrf.mxu1 }
 0x1b8   :  { %v344_v47 = vmax.f32 %v340_v45, 0.0 }
 0x1ba   :  { %346 = vst [vmem:[#allocation3 + $0x8] sm:$0xff] %v344_v47 }
 0x1bb   :  { %485 = shalt.err (!%p482_p4)
}
 0x1bc   :  { %s499_s4 = smov 128   ;;  %s500_s23 = smov 8  }
 0x1bd   :  { %358 = dma.vmem_to_hbm [thread:$0]  %s353_s22, 256, %s623_s5, [#allocation4], %s499_s4, %s499_s4, %s500_s23  }
 0x1be   :  { %494 = dma.done.wait [#allocation4], 256  }
 0x1bf   :  { %495 = vsyncadd [#allocation4], 4294967040 }
 0x1c0   :  { %362 = vsyncpa [#allocation4], 1 }

</bundles_post_ra>
